<compile_context>
chip_gen: v6e
topology: v6e:2x2x1
jax: 0.10.0
libtpu: 0.0.40
codegen_flags: <defaults>
</compile_context>

<pallas_src>
import numpy as np
import jax
import jax.numpy as jnp
from jax import lax
from jax.experimental import pallas as pl
from jax.experimental.pallas import tpu as pltpu

N_QUBITS = 4
N_LAYERS = 2
DIM = 2 ** N_QUBITS  # statevector dimension = 16


def _bit(i, wire):
    # PennyLane default.qubit convention: wire 0 is the most-significant bit.
    return (i >> (N_QUBITS - 1 - wire)) & 1


def _round_up(x, m):
    return ((x + m - 1) // m) * m


# --------------------------------------------------------------------------
# Pallas kernel: batched 4-qubit statevector simulation, batch on lanes
# --------------------------------------------------------------------------
def qdisc_kernel(x_ref, a_ref, out_ref):
    x = x_ref[...]                                  # (NQ, TB) RY angles
    c = jnp.cos(0.5 * x)                            # (NQ, TB)
    s = jnp.sin(0.5 * x)

    # basis-state index per sublane (0..15)
    idx = lax.broadcasted_iota(jnp.int32, (DIM, 1), 0)          # (DIM, 1)

    # |psi> after the RY layer is a real product state:
    #   psi[i, b] = prod_w ( cos(x[w,b]/2) if bit_w(i)==0 else sin(x[w,b]/2) )
    psi = jnp.ones((DIM, x.shape[1]), jnp.float32)              # (DIM, TB)
    for w in range(N_QUBITS):
        b = ((idx >> (N_QUBITS - 1 - w)) & 1).astype(jnp.float32)   # (DIM, 1)
        psi = psi * (c[w:w + 1, :] * (1.0 - b) + s[w:w + 1, :] * b)

    # Folded circuit + measurement: <Z_0> = psi^T A psi with
    # A = Re(U^dag Z0 U) precomputed host-side (weights-only constant).
    y = jnp.dot(a_ref[...], psi, preferred_element_type=jnp.float32)  # (DIM, TB)
    ev = jnp.sum(psi * y, axis=0, keepdims=True)                      # (1, TB)

    t = (ev + 1.0) * 0.5                      # t in [0, 1]; exp never overflows
    out_ref[...] = 1.0 / (1.0 + jnp.exp(-t))  # sigmoid((<Z_0> + 1)/2)


# --------------------------------------------------------------------------
# Host-side constant setup: fold CNOT ring + RZ layers + Z_0 into one matrix
# --------------------------------------------------------------------------
def _build_measurement_matrix(weights):
    """A = Re(U^dag Z0 U) with U = D2 C D1 C (column-vector convention)."""
    w = np.asarray(weights, np.float64)
    idx = np.arange(DIM)
    bits = np.stack(
        [(idx >> (N_QUBITS - 1 - q)) & 1 for q in range(N_QUBITS)], axis=0
    ).astype(np.float64)                                      # (NQ, DIM)

    # Ring-of-CNOTs as a basis permutation f: |i> -> |perm[i]>
    perm = idx.copy()
    for q in range(N_QUBITS):
        ctrl, tgt = q, (q + 1) % N_QUBITS
        flip = ((perm >> (N_QUBITS - 1 - ctrl)) & 1) * (1 << (N_QUBITS - 1 - tgt))
        perm = perm ^ flip
    C = np.zeros((DIM, DIM), np.float64)
    C[perm, idx] = 1.0                                        # C |i> = |perm[i]>

    U = np.eye(DIM, dtype=np.complex128)
    for layer in range(N_LAYERS):
        # RZ(phi) = diag(e^{-i phi/2}, e^{+i phi/2}) per wire
        theta = 0.5 * (w[layer] @ (2.0 * bits - 1.0))         # (DIM,)
        U = np.diag(np.exp(1j * theta)) @ (C @ U)

    z0 = 1.0 - 2.0 * bits[0]                                  # eigvals of Z_0
    M = U.conj().T @ np.diag(z0) @ U                          # Hermitian
    return jnp.asarray(np.real(M), jnp.float32)               # (DIM, DIM)


def discriminator_forward(inputs, weights, *, batch_tile=1024):
    """inputs: (B, n_qubits) f32, weights: (n_layers, n_qubits) f32 -> (B,) f32."""
    inputs = jnp.asarray(inputs, jnp.float32)
    B = inputs.shape[0]
    a_mat = _build_measurement_matrix(weights)

    # lane-dense batch tiling: tile is a multiple of 128; pad the batch.
    tile = _round_up(min(batch_tile, max(B, 1)), 128)
    padded_B = _round_up(B, tile)

    x_t = inputs.T                                            # (NQ, B)
    if padded_B != B:
        x_t = jnp.pad(x_t, ((0, 0), (0, padded_B - B)))       # zero angles = |0..0>

    out = pl.pallas_call(
        qdisc_kernel,
        out_shape=jax.ShapeDtypeStruct((1, padded_B), jnp.float32),
        grid=(padded_B // tile,),
        in_specs=[
            pl.BlockSpec((N_QUBITS, tile), lambda i: (0, i)),   # lane-dense input slab
            pl.BlockSpec((DIM, DIM), lambda i: (0, 0)),         # folded 16x16 matrix
        ],
        out_specs=pl.BlockSpec((1, tile), lambda i: (0, i)),    # lane-dense output row
        compiler_params=pltpu.CompilerParams(dimension_semantics=("parallel",)),
    )(x_t, a_mat)
    return out[0, :B]


# --------------------------------------------------------------------------
# Pure-numpy reference (independent statevector simulation) for validation
# --------------------------------------------------------------------------
def _apply_1q(psi, g, wire):
    psi = psi.reshape((2,) * N_QUBITS)
    psi = np.tensordot(g, psi, axes=([1], [wire]))
    psi = np.moveaxis(psi, 0, wire)
    return psi.reshape(-1)


def _apply_cnot(psi, control, target):
    out = np.empty_like(psi)
    for i in range(DIM):
        j = i ^ ((1 << (N_QUBITS - 1 - target)) if _bit(i, control) else 0)
        out[j] = psi[i]
    return out


def reference_forward(inputs, weights):
    inputs = np.asarray(inputs, dtype=np.float64)
    weights = np.asarray(weights, dtype=np.float64)
    outs = np.zeros(inputs.shape[0], dtype=np.float32)
    z = np.array([1.0 if _bit(i, 0) == 0 else -1.0 for i in range(DIM)])
    for b in range(inputs.shape[0]):
        psi = np.zeros(DIM, dtype=np.complex128)
        psi[0] = 1.0
        for w in range(N_QUBITS):
            th = inputs[b, w]
            g = np.array([[np.cos(th / 2), -np.sin(th / 2)],
                          [np.sin(th / 2), np.cos(th / 2)]], dtype=np.complex128)
            psi = _apply_1q(psi, g, w)
        for layer in range(N_LAYERS):
            for w in range(N_QUBITS):
                psi = _apply_cnot(psi, w, (w + 1) % N_QUBITS)
            for w in range(N_QUBITS):
                phi = weights[layer, w]
                g = np.diag([np.exp(-0.5j * phi), np.exp(0.5j * phi)])
                psi = _apply_1q(psi, g, w)
        ev = float(np.sum(np.abs(psi) ** 2 * z))
        outs[b] = 1.0 / (1.0 + np.exp(-(ev + 1.0) / 2.0))
    return outs


if __name__ == "__main__":
    key = jax.random.PRNGKey(0)
    k_in, k_w = jax.random.split(key)
    B = 200   # deliberately not a multiple of the tile: exercises padding
    inputs = jax.random.normal(k_in, (B, N_QUBITS), dtype=jnp.float32)
    # nn.Parameter(torch.randn(n_layers, n_qubits)) -> deterministic normal init
    weights = jax.random.normal(k_w, (N_LAYERS, N_QUBITS), dtype=jnp.float32)

    # batch_tile=128 -> padded batch 256, grid of 2 parallel steps.
    out = discriminator_forward(inputs, weights, batch_tile=128)
    out = jax.block_until_ready(out)

    ref = reference_forward(np.asarray(inputs), np.asarray(weights))
    np.testing.assert_allclose(np.asarray(out), ref, atol=2e-5, rtol=2e-5)
    print("KERNEL_OK")
</pallas_src>

<mosaic_0001>
module attributes {stable_mosaic.version = 11 : i64} {
  func.func @qdisc_kernel(%arg0: i32, %arg1: memref<4x128xf32, #tpu.memory_space<vmem>>, %arg2: memref<16x16xf32, #tpu.memory_space<vmem>>, %arg3: memref<1x128xf32, #tpu.memory_space<vmem>>) attributes {dimension_semantics = [#tpu.dimension_semantics<parallel>], iteration_bounds = array<i64: 2>, scalar_prefetch = 0 : i64, scratch_operands = 0 : i64, tpu.core_type = #tpu.core_type<tc>, window_params = [{transform_indices = @transform_0, window_bounds = array<i64: 4, 128>}, {pipeline_mode = #tpu.pipeline_mode<synchronous>, transform_indices = @transform_1, window_bounds = array<i64: 16, 16>}, {transform_indices = @transform_2, window_bounds = array<i64: 1, 128>}]} {
    %c0 = arith.constant 0 : index
    %c0_0 = arith.constant 0 : index
    %0 = vector.load %arg1[%c0, %c0_0] : memref<4x128xf32, #tpu.memory_space<vmem>>, vector<4x128xf32>
    %cst = arith.constant 5.000000e-01 : f32
    %1 = vector.broadcast %cst : f32 to vector<4x128xf32>
    %2 = arith.mulf %1, %0 : vector<4x128xf32>
    %3 = math.cos %2 : vector<4x128xf32>
    %cst_1 = arith.constant 5.000000e-01 : f32
    %4 = vector.broadcast %cst_1 : f32 to vector<4x128xf32>
    %5 = arith.mulf %4, %0 : vector<4x128xf32>
    %6 = math.sin %5 : vector<4x128xf32>
    %7 = tpu.iota {dimensions = array<i32: 0>} : vector<16x1xi32>
    %cst_2 = arith.constant 1.000000e+00 : f32
    %8 = vector.broadcast %cst_2 : f32 to vector<16x128xf32>
    %c3_i32 = arith.constant 3 : i32
    %9 = vector.broadcast %c3_i32 : i32 to vector<16x1xi32>
    %10 = arith.shrsi %7, %9 : vector<16x1xi32>
    %c1_i32 = arith.constant 1 : i32
    %11 = vector.broadcast %c1_i32 : i32 to vector<16x1xi32>
    %12 = arith.andi %10, %11 : vector<16x1xi32>
    %13 = arith.sitofp %12 : vector<16x1xi32> to vector<16x1xf32>
    %14 = vector.extract_strided_slice %3 {offsets = [0, 0], sizes = [1, 128], strides = [1, 1]} : vector<4x128xf32> to vector<1x128xf32>
    %cst_3 = arith.constant 1.000000e+00 : f32
    %15 = vector.broadcast %cst_3 : f32 to vector<16x1xf32>
    %16 = arith.subf %15, %13 : vector<16x1xf32>
    %17 = vector.broadcast %14 : vector<1x128xf32> to vector<16x128xf32>
    %18 = vector.broadcast %16 : vector<16x1xf32> to vector<16x128xf32>
    %19 = arith.mulf %17, %18 : vector<16x128xf32>
    %20 = vector.extract_strided_slice %6 {offsets = [0, 0], sizes = [1, 128], strides = [1, 1]} : vector<4x128xf32> to vector<1x128xf32>
    %21 = vector.broadcast %20 : vector<1x128xf32> to vector<16x128xf32>
    %22 = vector.broadcast %13 : vector<16x1xf32> to vector<16x128xf32>
    %23 = arith.mulf %21, %22 : vector<16x128xf32>
    %24 = arith.addf %19, %23 : vector<16x128xf32>
    %25 = arith.mulf %8, %24 : vector<16x128xf32>
    %c2_i32 = arith.constant 2 : i32
    %26 = vector.broadcast %c2_i32 : i32 to vector<16x1xi32>
    %27 = arith.shrsi %7, %26 : vector<16x1xi32>
    %c1_i32_4 = arith.constant 1 : i32
    %28 = vector.broadcast %c1_i32_4 : i32 to vector<16x1xi32>
    %29 = arith.andi %27, %28 : vector<16x1xi32>
    %30 = arith.sitofp %29 : vector<16x1xi32> to vector<16x1xf32>
    %31 = vector.extract_strided_slice %3 {offsets = [1, 0], sizes = [1, 128], strides = [1, 1]} : vector<4x128xf32> to vector<1x128xf32>
    %cst_5 = arith.constant 1.000000e+00 : f32
    %32 = vector.broadcast %cst_5 : f32 to vector<16x1xf32>
    %33 = arith.subf %32, %30 : vector<16x1xf32>
    %34 = vector.broadcast %31 : vector<1x128xf32> to vector<16x128xf32>
    %35 = vector.broadcast %33 : vector<16x1xf32> to vector<16x128xf32>
    %36 = arith.mulf %34, %35 : vector<16x128xf32>
    %37 = vector.extract_strided_slice %6 {offsets = [1, 0], sizes = [1, 128], strides = [1, 1]} : vector<4x128xf32> to vector<1x128xf32>
    %38 = vector.broadcast %37 : vector<1x128xf32> to vector<16x128xf32>
    %39 = vector.broadcast %30 : vector<16x1xf32> to vector<16x128xf32>
    %40 = arith.mulf %38, %39 : vector<16x128xf32>
    %41 = arith.addf %36, %40 : vector<16x128xf32>
    %42 = arith.mulf %25, %41 : vector<16x128xf32>
    %c1_i32_6 = arith.constant 1 : i32
    %43 = vector.broadcast %c1_i32_6 : i32 to vector<16x1xi32>
    %44 = arith.shrsi %7, %43 : vector<16x1xi32>
    %c1_i32_7 = arith.constant 1 : i32
    %45 = vector.broadcast %c1_i32_7 : i32 to vector<16x1xi32>
    %46 = arith.andi %44, %45 : vector<16x1xi32>
    %47 = arith.sitofp %46 : vector<16x1xi32> to vector<16x1xf32>
    %48 = vector.extract_strided_slice %3 {offsets = [2, 0], sizes = [1, 128], strides = [1, 1]} : vector<4x128xf32> to vector<1x128xf32>
    %cst_8 = arith.constant 1.000000e+00 : f32
    %49 = vector.broadcast %cst_8 : f32 to vector<16x1xf32>
    %50 = arith.subf %49, %47 : vector<16x1xf32>
    %51 = vector.broadcast %48 : vector<1x128xf32> to vector<16x128xf32>
    %52 = vector.broadcast %50 : vector<16x1xf32> to vector<16x128xf32>
    %53 = arith.mulf %51, %52 : vector<16x128xf32>
    %54 = vector.extract_strided_slice %6 {offsets = [2, 0], sizes = [1, 128], strides = [1, 1]} : vector<4x128xf32> to vector<1x128xf32>
    %55 = vector.broadcast %54 : vector<1x128xf32> to vector<16x128xf32>
    %56 = vector.broadcast %47 : vector<16x1xf32> to vector<16x128xf32>
    %57 = arith.mulf %55, %56 : vector<16x128xf32>
    %58 = arith.addf %53, %57 : vector<16x128xf32>
    %59 = arith.mulf %42, %58 : vector<16x128xf32>
    %c0_i32 = arith.constant 0 : i32
    %60 = vector.broadcast %c0_i32 : i32 to vector<16x1xi32>
    %61 = arith.shrsi %7, %60 : vector<16x1xi32>
    %c1_i32_9 = arith.constant 1 : i32
    %62 = vector.broadcast %c1_i32_9 : i32 to vector<16x1xi32>
    %63 = arith.andi %61, %62 : vector<16x1xi32>
    %64 = arith.sitofp %63 : vector<16x1xi32> to vector<16x1xf32>
    %65 = vector.extract_strided_slice %3 {offsets = [3, 0], sizes = [1, 128], strides = [1, 1]} : vector<4x128xf32> to vector<1x128xf32>
    %cst_10 = arith.constant 1.000000e+00 : f32
    %66 = vector.broadcast %cst_10 : f32 to vector<16x1xf32>
    %67 = arith.subf %66, %64 : vector<16x1xf32>
    %68 = vector.broadcast %65 : vector<1x128xf32> to vector<16x128xf32>
    %69 = vector.broadcast %67 : vector<16x1xf32> to vector<16x128xf32>
    %70 = arith.mulf %68, %69 : vector<16x128xf32>
    %71 = vector.extract_strided_slice %6 {offsets = [3, 0], sizes = [1, 128], strides = [1, 1]} : vector<4x128xf32> to vector<1x128xf32>
    %72 = vector.broadcast %71 : vector<1x128xf32> to vector<16x128xf32>
    %73 = vector.broadcast %64 : vector<16x1xf32> to vector<16x128xf32>
    %74 = arith.mulf %72, %73 : vector<16x128xf32>
    %75 = arith.addf %70, %74 : vector<16x128xf32>
    %76 = arith.mulf %59, %75 : vector<16x128xf32>
    %c0_11 = arith.constant 0 : index
    %c0_12 = arith.constant 0 : index
    %77 = vector.load %arg2[%c0_11, %c0_12] : memref<16x16xf32, #tpu.memory_space<vmem>>, vector<16x16xf32>
    %cst_13 = arith.constant dense<0.000000e+00> : vector<16x128xf32>
    %78 = tpu.matmul %77, %76, %cst_13 {dimension_numbers = #tpu.dot_dimension_numbers<[1], [0], [0], [1], [0, 0, 1, 1], [], []>} : vector<16x16xf32>, vector<16x128xf32>, vector<16x128xf32> -> vector<16x128xf32>
    %79 = arith.mulf %76, %78 : vector<16x128xf32>
    %cst_14 = arith.constant dense<0.000000e+00> : vector<128xf32>
    %80 = vector.multi_reduction <add>, %79, %cst_14 [0] : vector<16x128xf32> to vector<128xf32>
    %81 = vector.shape_cast %80 : vector<128xf32> to vector<1x128xf32>
    %cst_15 = arith.constant 1.000000e+00 : f32
    %82 = vector.broadcast %cst_15 : f32 to vector<1x128xf32>
    %83 = arith.addf %81, %82 : vector<1x128xf32>
    %cst_16 = arith.constant 5.000000e-01 : f32
    %84 = vector.broadcast %cst_16 : f32 to vector<1x128xf32>
    %85 = arith.mulf %83, %84 : vector<1x128xf32>
    %cst_17 = arith.constant 0.000000e+00 : f32
    %86 = vector.broadcast %cst_17 : f32 to vector<1x128xf32>
    %87 = arith.subf %86, %85 : vector<1x128xf32>
    %88 = math.exp %87 : vector<1x128xf32>
    %cst_18 = arith.constant 1.000000e+00 : f32
    %89 = vector.broadcast %cst_18 : f32 to vector<1x128xf32>
    %90 = arith.addf %89, %88 : vector<1x128xf32>
    %cst_19 = arith.constant 1.000000e+00 : f32
    %91 = vector.broadcast %cst_19 : f32 to vector<1x128xf32>
    %92 = arith.divf %91, %90 : vector<1x128xf32>
    %c0_20 = arith.constant 0 : index
    %c0_21 = arith.constant 0 : index
    %93 = vector.load %arg3[%c0_20, %c0_21] : memref<1x128xf32, #tpu.memory_space<vmem>>, vector<1x128xf32>
    tpu.vector_store %arg3[%c0_20, %c0_21], %92 {strides = array<i32>} : memref<1x128xf32, #tpu.memory_space<vmem>>, vector<1x128xf32>,
    return
  }
  func.func @transform_0(%arg0: i32) -> (i32, i32) {
    %c0_i32 = arith.constant 0 : i32
    %c0_i32_0 = arith.constant 0 : i32
    return %c0_i32, %arg0 : i32, i32
  }
  func.func @transform_1(%arg0: i32) -> (i32, i32) {
    %c0_i32 = arith.constant 0 : i32
    %c0_i32_0 = arith.constant 0 : i32
    %c0_i32_1 = arith.constant 0 : i32
    return %c0_i32, %c0_i32_0 : i32, i32
  }
  func.func @transform_2(%arg0: i32) -> (i32, i32) {
    %c0_i32 = arith.constant 0 : i32
    %c0_i32_0 = arith.constant 0 : i32
    return %c0_i32, %arg0 : i32, i32
  }
}

</mosaic_0001>

<bundles_post_ra>
// kernel: tpu_custom_call.1
= control target key start
LH: loop header
LB: loop body
LE: loop exit
PB: predicated region body
PF: predicated region fallthrough
CT: control target
= control target key end

     0   :  { %7 = vsyncpa [#allocation3], 0  ;;  %s1136_s0 = inlined_call_operand.hbm [shape: f32[4,256], index: 0, kind: input, shape index: {}]   ;;  %s1137_s1 = inlined_call_operand.hbm [shape: f32[16,16], index: 1, kind: input, shape index: {}]   ;;  %s1138_s2 = inlined_call_operand.hbm [shape: f32[1,256], index: 2, kind: output, shape index: {}]  }
   0x1   :  { %9 = vsyncpa [#allocation3 + $0x1], 0 }
   0x2   :  { %10 = vsyncpa [#allocation6], 0 }
   0x3   :  { %11 = vsyncpa [#allocation4], 0 }
   0x4   :  { %13 = vsyncpa [#allocation4 + $0x1], 0  ;;  %s928_s9 = smov 0   ;;  %s930_s10 = smov 0  }
   0x5   :  { %s932_s11 = smov 0   ;;  %s934_s12 = smov 0  }
   0x6 LB: > { %s949_s13 = sadd.s32 4294967295, %s900_s12   ;;  %s668_s14 = sadd.s32 4294967294, %s900_s12   ;;  %s900_s12 = sphi %s934_s12, %s1160_s12   ;;  %s896_s11 = sphi %s932_s11, %s1159_s11   ;;  %s892_s10 = sphi %s930_s10, %s1158_s10   ;;  %s888_s9 = sphi %s928_s9, %s1157_s9  }
   0x7   : > { %p39_p0 = scmp.ne.s32.totalorder %s892_s10, %s888_s9  ;;  %p1139_p1 = scmp.eq.s32.totalorder %s949_s13, 0 }
   0x8   : > { %p90_p3 = scmp.eq.s32.totalorder %s668_s14, 1  ;;  %p669_p5 = scmp.ge.s32.totalorder %s900_s12, 1 }
   0x9   : > { %p958_p4 = por %p1139_p1, %p39_p0  ;;  %p97_p7 = scmp.lt.s32.totalorder %s900_s12, 3 }
   0xa   : > { %p963_p6 = por %p90_p3, %p39_p0  ;;  %s902_s18 = smov [#allocation5]  }
   0xb   : > { %s1143_s15 = scalar_select %p958_p4, 1, 0 }
   0xc   : > { %s1144_s16 = scalar_select %p963_p6, 1, 0 }
   0xd   : > { %p968_p8 = pnand %p669_p5, %p97_p7  ;;  %s109_s19 = sshll.u32 %s902_s18, 4  ;;  %s110_s19 = int_to_ptr.vmem [resolvable:$true] %s109_s19 }
   0xe   : > { %s982_s21 = sadd.s32 1, %s900_s12   ;;  %s26_s22 = sadd.s32 1, %s896_s11 }
   0xf   : > { %s1145_s17 = scalar_select %p968_p8, 1, 0 }
  0x10   : > { %p713_p9 = pneg %p968_p8  ;;  %s23_s23 = ssub.s32 %s900_s12, %s982_s21 }
  0x11   : > { %s789_s24 = scalar_lea.vmem %s110_s19, 256  ;;  %p797_p5 = scmp.lt.s32.totalorder %s110_s19, %s110_s19 }
  0x12   : > { %p977_p11 = pnand %p713_p9, %p1139_p1  ;;  %p790_p13 = scmp.ne.s32.totalorder %s110_s19, %s789_s24 }
  0x13   : > { %p798_p7 = scmp.lt.s32.totalorder %s789_s24, %s789_s24 }
  0x14   : > { %p780_p12 = pneg %p977_p11 }
  0x15   : > { %p799_p10 = por %p798_p7, %p797_p5 }
  0x16   : > { %p792_p0 = pnand %p790_p13, %p780_p12 }
  0x18   : > { %p793_p3 = pneg %p792_p0 }
  0x1a   : > { %p800_p2 = pnand %p799_p10, %p793_p3 }
  0x1c   : > { %803 = shalt.err (!%p800_p2)
}
  0x1d   : > { %s903_s25 = smov 128   ;;  %s904_s26 = smov 8  }
  0x1e   : > { %716 = dma.hbm_to_vmem [thread:$0]  (!%p977_p11), %s1137_s1, 256, %s110_s19, [#allocation6], %s903_s25, %s903_s25, %s904_s26  }
  0x1f   : > { %p24_p9 = scmp.eq.s32.totalorder %s23_s23, 0  ;;  %p33_p12 = scmp.ne.s32.totalorder %s896_s11, %s892_s10 }
  0x20   : > { %p34_p10 = scmp.eq.s32.totalorder %s900_s12, 0  ;;  %p726_p2 = scmp.lt.s32.totalorder %s900_s12, 2 }
  0x21   : > { %s999_s29 = scalar_select %p24_p9, %s896_s11, %s26_s22  }
  0x22   : > { %p35_p13 = por %p34_p10, %p33_p12  ;;  %p1147_p0 = scmp.eq.s32.totalorder %s949_s13, 1 }
  0x23   : > { %s123_s3 = sand.u32 1, %s896_s11   ;;  %s673_s4 = sshll.u32 %s900_s12, 6 }
  0x24   : > { %p1003_p3 = por %p1147_p0, %p33_p12  ;;  %s672_s5 = sshll.u32 %s123_s3, 2 }
  0x25   : > { %s1012_s8 = scalar_lea.hbm %s1136_s0, %s673_s4  ;;  %s127_s14 = scalar_lea.vmem [#allocation2], %s672_s5 }
  0x26   : > { %s1148_s30 = scalar_select %p1003_p3, 1, 0 }
  0x27   : > { %s134_s18 = sshll.u32 %s127_s14, 4  ;;  %p1014_p11 = pnand %p726_p2, %p35_p13  ;;  %s135_s18 = int_to_ptr.vmem [resolvable:$true] %s134_s18 }
  0x28   : > { %s124_s20 = scalar_lea.sflag [#allocation3], %s123_s3  ;;  %s804_s22 = scalar_lea.hbm %s1012_s8, 64 }
  0x29   : > { %p805_p5 = scmp.ne.s32.totalorder %s1012_s8, %s804_s22  ;;  %p806_p7 = pneg %p1014_p11 }
  0x2a   : > { %s809_s25 = scalar_lea.hbm %s1136_s0, 128  ;;  %p810_p10 = scmp.lt.s32.totalorder %s1012_s8, %s1136_s0 }
  0x2b   : > { %p807_p9 = pnand %p806_p7, %p805_p5  ;;  %p811_p2 = scmp.lt.s32.totalorder %s809_s25, %s804_s22 }
  0x2d   : > { %p808_p12 = pneg %p807_p9  ;;  %p812_p13 = por %p811_p2, %p810_p10 }
  0x2f   : > { %p813_p0 = pnand %p812_p13, %p808_p12 }
  0x31   : > { %816 = shalt.err (!%p813_p0)
}
  0x32   : > { %s817_s28 = scalar_lea.vmem %s135_s18, 64  ;;  %s905_s3 = smov [#allocation2]  }
  0x33   : > { %p818_p1 = scmp.ne.s32.totalorder %s135_s18, %s817_s28  ;;  %s822_s4 = sshll.u32 %s905_s3, 4  ;;  %s823_s4 = int_to_ptr.vmem [resolvable:$false] %s822_s4 }
  0x34   : > { %s824_s5 = scalar_lea.vmem %s823_s4, 128  ;;  %p825_p5 = scmp.lt.s32.totalorder %s135_s18, %s823_s4 }
  0x35   : > { %p820_p6 = pnand %p818_p1, %p806_p7  ;;  %p826_p9 = scmp.lt.s32.totalorder %s824_s5, %s817_s28 }
  0x37   : > { %p821_p3 = pneg %p820_p6  ;;  %p827_p4 = por %p826_p9, %p825_p5 }
  0x39   : > { %p828_p8 = pnand %p827_p4, %p821_p3 }
  0x3b   : > { %831 = shalt.err (!%p828_p8)
}
  0x3c   : > { %720 = dma.hbm_to_vmem [thread:$0]  (!%p1014_p11), %s1012_s8, 64, %s135_s18, %s124_s20  }
  0x3d   : > { %p1150_p12 = scmp.ne.s32.totalorder %s1145_s17, 0 }
  0x3e   : > { %s1035_s6 = sand.u32 (!%p1150_p12), 1, %s892_s10   ;;  %p1151_p1 = scmp.ne.s32.totalorder (!%p1150_p12), %s1143_s15, 0 }
  0x3f   : > { %143 = sbr.rel (%p1150_p12) target bundleno = 437 (0x1b5), region = 28  ;;  %s675_s7 = sshll.u32 (!%p1150_p12), %s1035_s6, 2 }
  0x40   : > { %s146_s14 = scalar_lea.sflag (!%p1150_p12), [#allocation3], %s1035_s6  ;;  %s149_s22 = scalar_lea.vmem (!%p1150_p12), [#allocation2], %s675_s7 }
  0x44   : > { %875 = dma.done.wait (%p1151_p1), %s146_s14, 64  }
  0x45   : > { %877 = vsyncadd (%p1151_p1), %s146_s14, 4294967232  ;;  %p1152_p4 = scmp.eq.s32.totalorder %s949_s13, 0 }
  0x47   : > { %879 = dma.done.wait (%p1152_p4), [#allocation6], 256   ;;  %p1153_p6 = pmov %p1152_p4 }
  0x48   : > { %vm479_vm0 = vcmask 130048   ;;  %v173_v0 = vld [vmem:[%s149_s22] sm:$0xf]  ;;  %v477_v2 = vld [vmem:[#allocation5] sm:$0xff]  ;;  %v906_v14 = vmov 683565275  }
  0x49   : > { %881 = vsyncadd (%p1153_p6), [#allocation6], 4294967040  ;;  %v1047_v1 = vmul.f32 0.5, %v173_v0  ;;  %698 = vmatprep.mubr.msk.f32.mxu0 %vm479_vm0, %v477_v2  ;;  %v907_v16 = vmov 2475754826   ;;  %s687_s15 = sshll.u32 %s949_s13, 4 }
  0x4a   : > { %v908_v18 = vmov 2131351028   ;;  %v909_v20 = vmov 2102212464   ;;  %v910_v22 = vmov 920167782   ;;  %s1099_s20 = scalar_lea.hbm %s1138_s2, %s687_s15 }
  0x4b   : > { %v178_v3 = vand.u32 2139095040, %v1047_v1  ;;  %v175_v5 = vand.u32 2147483647, %v1047_v1  ;;  %v911_v29 = vmov 1326507024   ;;  %vm177_vm8 = vcmp.lt.s32.totalorder %v1047_v1, 0 }
  0x4c   : > { %vm267_vm10 = vweird.f32 %v1047_v1  ;;  %s172_s17 = scalar_lea.vmem [#allocation7], %s1035_s6  ;;  %s580_s23 = scalar_lea.sflag [#allocation4], %s1035_s6 }
  0x4d   : > { %v179_v4 = vshrl.u32 %v178_v3, 23  ;;  %v182_v8 = vand.u32 8388607, %v175_v5  ;;  %vm176_vm9 = vcmp.le.f32.partialorder %v175_v5, 0.7853982  ;;  %s592_s8 = sshll.u32 %s172_s17, 4  ;;  %s593_s8 = int_to_ptr.vmem [resolvable:$true] %s592_s8 }
  0x4e   : > { %s832_s24 = scalar_lea.vmem %s593_s8, 16  ;;  %p1154_p3 = scmp.ne.s32.totalorder %s1148_s30, 0 }
  0x4f   : > { %v677_v6 = vadd.s32 4294967169, %v179_v4  ;;  %v183_v11 = vor.u32 8388608, %v182_v8  ;;  %p833_p8 = scmp.ne.s32.totalorder %s593_s8, %s832_s24  ;;  %s912_s25 = smov [#allocation7]  }
  0x50   : > { %s836_s26 = sshll.u32 %s912_s25, 4  ;;  %s837_s26 = int_to_ptr.vmem [resolvable:$false] %s836_s26 }
  0x51   : > { %v185_v7 = vadd.s32 1, %v677_v6  ;;  %v223_v31 = vshll.u32 %v183_v11, 8  ;;  %p834_p11 = pnand %p833_p8, %p1154_p3  ;;  %s838_s13 = scalar_lea.vmem %s837_s26, 32 }
  0x52   : > { %p839_p10 = scmp.lt.s32.totalorder %s593_s8, %s837_s26  ;;  %p840_p2 = scmp.lt.s32.totalorder %s838_s13, %s832_s24 }
  0x53   : > { %vm186_vm1 = vcmp.gt.s32.totalorder %v185_v7, 0  ;;  %p835_p7 = pneg %p834_p11 }
  0x54   : > { %v187_v9 = vsel %vm186_vm1, %v185_v7, 0  ;;  %p841_p13 = por %p840_p2, %p839_p10 }
  0x55   : > { %v189_v10 = vand.u32 31, %v187_v9  ;;  %v188_v12 = vshrl.u32 %v187_v9, 5 }
  0x56   : > { %p842_p0 = pnand %p841_p13, %p835_p7 }
  0x57   : > { %v190_v13 = vsub.s32 32, %v189_v10  ;;  %v192_v15 = vshll.u32 %v906_v14, %v189_v10  ;;  %v195_v17 = vshll.u32 %v907_v16, %v189_v10  ;;  %v198_v19 = vshll.u32 %v908_v18, %v189_v10 }
  0x58   : > { %v201_v21 = vshll.u32 %v909_v20, %v189_v10  ;;  %v204_v23 = vshll.u32 %v910_v22, %v189_v10  ;;  %vm207_vm2 = vcmp.lt.s32.totalorder %v188_v12, 1  ;;  %vm210_vm3 = vcmp.lt.s32.totalorder %v188_v12, 4 }
  0x59   : > { %v191_v24 = vshrl.u32 %v906_v14, %v190_v13  ;;  %v193_v25 = vshrl.u32 %v907_v16, %v190_v13  ;;  %v196_v26 = vshrl.u32 %v908_v18, %v190_v13  ;;  %v199_v27 = vshrl.u32 %v909_v20, %v190_v13 }
  0x5a   : > { %v202_v28 = vshrl.u32 %v910_v22, %v190_v13  ;;  %v205_v30 = vshrl.u32 %v911_v29, %v190_v13  ;;  %vm208_vm4 = vcmp.lt.s32.totalorder %v188_v12, 2  ;;  %vm209_vm5 = vcmp.lt.s32.totalorder %v188_v12, 3 }
  0x5b   : > { %v194_v32 = vor.u32 %v193_v25, %v192_v15  ;;  %v197_v33 = vor.u32 %v196_v26, %v195_v17  ;;  %v200_v34 = vor.u32 %v199_v27, %v198_v19  ;;  %v382_v15 = vlaneseq }
  0x5c   : > { %v203_v35 = vor.u32 %v202_v28, %v201_v21  ;;  %v206_v36 = vor.u32 %v205_v30, %v204_v23 }
  0x5d   : > { %v211_v37 = vsel %vm207_vm2, %v191_v24, %v194_v32  ;;  %v212_v38 = vsel %vm210_vm3, %v200_v34, 2102212464  ;;  %v215_v39 = vsel %vm207_vm2, %v194_v32, %v197_v33  ;;  %v219_v40 = vsel %vm207_vm2, %v197_v33, %v200_v34 }
  0x5e   : > { %v213_v41 = vsel %vm209_vm5, %v197_v33, %v212_v38  ;;  %v216_v42 = vsel %vm210_vm3, %v203_v35, 920167782  ;;  %v220_v43 = vsel %vm210_vm3, %v206_v36, 1326507024  ;;  %v1067_v19 = vshrl.u32 %v382_v15, 7 }
  0x5f   : > { %v217_v44 = vsel %vm209_vm5, %v200_v34, %v216_v42  ;;  %v221_v45 = vsel %vm209_vm5, %v203_v35, %v220_v43  ;;  %v214_v46 = vsel %vm208_vm4, %v211_v37, %v213_v41 }
  0x60   : > { %v218_v47 = vsel %vm208_vm4, %v215_v39, %v217_v44  ;;  %v222_v48 = vsel %vm208_vm4, %v219_v40, %v221_v45  ;;  %v230_v53 = vmul.u32 %v223_v31, %v214_v46  ;;  %v384_v23 = vadd.s32 8, %v1067_v19 }
  0x61   : > { %v1054_v49 = vmul.u32.u64.low %v223_v31, %v222_v48  ;;  %v1055_v50 = vmul.u32.u64.high %v223_v31, %v222_v48, %v1054_v49  ;;  %v1057_v51 = vmul.u32.u64.low %v223_v31, %v218_v47  ;;  %v1058_v52 = vmul.u32.u64.high %v223_v31, %v218_v47, %v1057_v51 }
  0x62   : > { %v385_v25 = vshra.s32 %v1067_v19, 3  ;;  %v407_v26 = vshra.s32 %v1067_v19, 2  ;;  %v431_v27 = vshra.s32 %v1067_v19, 1  ;;  %v386_v5 = vshra.s32 %v384_v23, 3 }
  0x63   : > { %vm232_vm6 = vc.u32 %v1055_v50, %v1057_v51  ;;  %v233_v54 = vadd.s32 1, %v1058_v52  ;;  %v231_v2 = vadd.s32 %v1057_v51, %v1055_v50  ;;  %v408_v29 = vshra.s32 %v384_v23, 2 }
  0x64   : > { %v432_v30 = vshra.s32 %v384_v23, 1  ;;  %v456_v31 = vand.u32 1, %v384_v23  ;;  %v1074_v32 = vand.u32 1, %v385_v25  ;;  %v1076_v33 = vand.u32 1, %v407_v26 }
  0x65   : > { %v234_v55 = vsel %vm232_vm6, %v233_v54, %v1058_v52  ;;  %v1078_v34 = vand.u32 1, %v431_v27  ;;  %v388_v37 = vand.u32 1, %v386_v5  ;;  %v410_v38 = vand.u32 1, %v408_v29 }
  0x66   : > { %v235_v56 = vadd.s32 %v234_v55, %v230_v53  ;;  %v395_v39 = vsub.s32 0, %v1067_v19  ;;  %v417_v40 = vsub.s32 1, %v1067_v19  ;;  %v434_v41 = vand.u32 1, %v432_v30 }
  0x67   : > { %v441_v42 = vsub.s32 2, %v1067_v19  ;;  %v458_v43 = vcvt.s32.f32 %v456_v31  ;;  %v463_v44 = vsub.s32 3, %v1067_v19  ;;  %v455_v45 = vand.u32 1, %v1067_v19 }
  0x68   : > { %v236_v57 = vadd.s32 536870912, %v235_v56  ;;  %v389_v46 = vcvt.s32.f32 %v1074_v32  ;;  %v411_v47 = vcvt.s32.f32 %v1076_v33  ;;  %v435_v48 = vcvt.s32.f32 %v1078_v34 }
  0x69   : > { %v390_v50 = vcvt.s32.f32 %v388_v37  ;;  %v412_v51 = vcvt.s32.f32 %v410_v38  ;;  %v436_v54 = vcvt.s32.f32 %v434_v41 }
  0x6a   : > { %v237_v58 = vshrl.u32 %v236_v57, 30 }
  0x6c   : > { %v238_v59 = vshll.u32 %v237_v58, 30  ;;  %v261_v17 = vsub.s32 4, %v237_v58 }
  0x6e   : > { %v239_v60 = vsub.s32 %v235_v56, %v238_v59  ;;  %v262_v21 = vsel %vm177_vm8, %v261_v17, %v237_v58  ;;  %v457_v56 = vcvt.s32.f32 %v455_v45  ;;  %v460_v59 = vsub.f32 1.0, %v458_v43 }
  0x6f   : > { %v264_v24 = vsel %vm176_vm9, 0, %v262_v21 }
  0x70   : > { %v241_v61 = vsub.s32 0, %v239_v60  ;;  %v371_v28 = vadd.s32 3, %v264_v24  ;;  %v268_v35 = vand.u32 3, %v264_v24 }
  0x72   : > { %v678_v62 = vmin.u32 %v241_v61, %v239_v60  ;;  %v372_v36 = vand.u32 3, %v371_v28  ;;  %vm273_vm11 = vcmp.eq.s32.totalorder %v268_v35, 2  ;;  %vm270_vm13 = vcmp.eq.s32.totalorder %v268_v35, 0 }
  0x73   : > { %vm269_vm15 = vcmp.lt.s32.totalorder %v268_v35, 2 }
  0x74   : > { %v243_v63 = vclz %v678_v62  ;;  %vm377_vm12 = vcmp.eq.s32.totalorder %v372_v36, 2  ;;  %vm374_vm14 = vcmp.eq.s32.totalorder %v372_v36, 0  ;;  %vm373_vm1 = vcmp.lt.s32.totalorder %v372_v36, 2 }
  0x76   : > { %v679_v0 = vadd.s32 4294967294, %v243_v63  ;;  %v392_v63 = vsub.f32 1.0, %v390_v50 }
  0x78   : > { %vm680_vm7 = vcmp.lt.s32.totalorder %v679_v0, 0 }
  0x79   : > { %v246_v3 = vsel %vm680_vm7, 0, %v679_v0  ;;  %v414_v0 = vsub.f32 1.0, %v412_v51 }
  0x7a   : > { %v247_v4 = vsub.s32 32, %v246_v3  ;;  %v248_v6 = vshll.u32 %v239_v60, %v246_v3  ;;  %v251_v7 = vsub.s32 4294967266, %v246_v3  ;;  %v391_v60 = vsub.f32 1.0, %v389_v46 }
  0x7c   : > { %v249_v8 = vshrl.u32 %v231_v2, %v247_v4  ;;  %v252_v9 = vadd.s32 127, %v251_v7  ;;  %v438_v4 = vsub.f32 1.0, %v436_v54 }
  0x7e   : > { %v250_v10 = vor.u32 %v249_v8, %v248_v6  ;;  %v253_v11 = vshll.u32 %v252_v9, 23  ;;  %v413_v6 = vsub.f32 1.0, %v411_v47  ;;  %v437_v9 = vsub.f32 1.0, %v435_v48 }
  0x80   : > { %v254_v12 = vor.u32 4788187, %v253_v11  ;;  %v257_v13 = vcvt.s32.f32 %v250_v10  ;;  %v459_v10 = vsub.f32 1.0, %v457_v56 }
  0x82   : > { %v255_v14 = vand.u32 2147483647, %v254_v12 }
  0x84   : > { %v258_v16 = vmul.f32 %v257_v13, %v255_v14 }
  0x86   : > { %v259_v18 = vxor.u32 2147483648, %v258_v16 }
  0x88   : > { %v260_v20 = vsel %vm177_vm8, %v259_v18, %v258_v16 }
  0x89   : > { %v263_v22 = vsel %vm176_vm9, %v1047_v1, %v260_v20 }
  0x8a   : > { %770 = vcosq.f32 %v263_v22 }
  0x8b   : > { %772 = vsinq.f32 %v263_v22 }
  0x97   : > { %v771_v49 = vpop.eup %770 }
  0x98   : > { %v773_v52 = vpop.eup %772  ;;  %v274_v53 = vxor.u32 2147483648, %v771_v49 }
  0x99   : > { %v271_v55 = vxor.u32 2147483648, %v773_v52 }
  0x9a   : > { %v275_v57 = vsel %vm273_vm11, %v274_v53, %v773_v52  ;;  %v379_v58 = vsel %vm377_vm12, %v274_v53, %v773_v52 }
  0x9b   : > { %v272_v61 = vsel %vm270_vm13, %v771_v49, %v271_v55  ;;  %v376_v62 = vsel %vm374_vm14, %v771_v49, %v271_v55  ;;  %v478_v49 = vld [vmem:[#allocation5 + $0x8] sm:$0xff] }
  0x9c   : > { %v276_v2 = vsel %vm269_vm15, %v272_v61, %v275_v57  ;;  %v380_v3 = vsel %vm373_vm1, %v376_v62, %v379_v58 }
  0x9d   : > { %v277_v7 = vsel %vm267_vm10, nan, %v276_v2  ;;  %v381_v8 = vsel %vm267_vm10, nan, %v380_v3 }
  0x9e   : > { %v396_v11 = vrot.slane %v277_v7, %v395_v39  ;;  %v402_v12 = vrot.slane %v381_v8, %v395_v39  ;;  %v418_v13 = vrot.slane %v277_v7, %v417_v40  ;;  %v424_v14 = vrot.slane %v381_v8, %v417_v40 }
  0x9f   : > { %v442_v15 = vrot.slane %v277_v7, %v441_v42  ;;  %v448_v16 = vrot.slane %v381_v8, %v441_v42  ;;  %v464_v17 = vrot.slane %v277_v7, %v463_v44  ;;  %v470_v18 = vrot.slane %v381_v8, %v463_v44 }
  0xa0   : > { %v398_v19 = vmul.f32 %v396_v11, %v392_v63  ;;  %v404_v20 = vmul.f32 %v402_v12, %v390_v50  ;;  %v420_v21 = vmul.f32 %v418_v13, %v414_v0  ;;  %v426_v22 = vmul.f32 %v424_v14, %v412_v51 }
  0xa1   : > { %v444_v23 = vmul.f32 %v442_v15, %v438_v4  ;;  %v450_v24 = vmul.f32 %v448_v16, %v436_v54  ;;  %v466_v25 = vmul.f32 %v464_v17, %v460_v59  ;;  %v472_v26 = vmul.f32 %v470_v18, %v458_v43 }
  0xa2   : > { %v406_v1 = vadd.f32 %v404_v20, %v398_v19  ;;  %v428_v27 = vadd.f32 %v426_v22, %v420_v21  ;;  %v397_v28 = vmul.f32 %v396_v11, %v391_v60  ;;  %v403_v5 = vmul.f32 %v402_v12, %v389_v46 }
  0xa3   : > { %v452_v29 = vadd.f32 %v450_v24, %v444_v23  ;;  %v474_v30 = vadd.f32 %v472_v26, %v466_v25  ;;  %v419_v31 = vmul.f32 %v418_v13, %v413_v6  ;;  %v425_v32 = vmul.f32 %v424_v14, %v411_v47 }
  0xa4   : > { %v430_v33 = vmul.f32 %v428_v27, %v406_v1  ;;  %v405_v34 = vadd.f32 %v403_v5, %v397_v28  ;;  %v443_v35 = vmul.f32 %v442_v15, %v437_v9  ;;  %v449_v36 = vmul.f32 %v448_v16, %v435_v48 }
  0xa5   : > { %v427_v37 = vadd.f32 %v425_v32, %v419_v31  ;;  %v465_v38 = vmul.f32 %v464_v17, %v459_v10  ;;  %v471_v39 = vmul.f32 %v470_v18, %v457_v56 }
  0xa6   : > { %v454_v40 = vmul.f32 %v452_v29, %v430_v33  ;;  %v451_v41 = vadd.f32 %v449_v36, %v443_v35 }
  0xa7   : > { %v429_v42 = vmul.f32 %v427_v37, %v405_v34  ;;  %v473_v44 = vadd.f32 %v471_v39, %v465_v38 }
  0xa8   : > { %v476_v43 = vmul.f32 %v474_v30, %v454_v40 }
  0xa9   : > { %v453_v45 = vmul.f32 %v451_v41, %v429_v42 }
  0xaa   : > { %694 = vmatprep.subr.mxu0 %v476_v43 }
  0xab   : > { %695 = vmatpush3.msra.mxu0 %v476_v43  ;;  %v475_v46 = vmul.f32 %v473_v44, %v453_v45 }
  0xad   : > { %696 = vmatprep.subr.mxu0 %v475_v46 }
  0xae   : > { %697 = vmatpush3.msra.mxu0 %v475_v46 }
  0xaf   : > { %699 = vmatmul.mubr.msk.f32.vlgmr.msra.gmra.mxu0 %vm479_vm0, %v478_v49 }
 0x16f   : > { %v700_v47 = vpop.f32.mrf.mxu0 }
 0x170   : > { %v562_v48 = vmul.f32 %v700_v47, %v476_v43 }
 0x171   : > { %v552_v50 = vpop.f32.mrf.mxu0 }
 0x172   : > { %v561_v51 = vmul.f32 %v552_v50, %v475_v46 }
 0x174   : > { %v563_v52 = vadd.f32 %v562_v48, %v561_v51 }
 0x176   : > { %v564_v53 = vrot.slane %v563_v52, 4 }
 0x178   : > { %v565_v54 = vadd.f32 %v564_v53, %v563_v52 }
 0x17a   : > { %v566_v55 = vrot.slane %v565_v54, 2 }
 0x17c   : > { %v567_v56 = vadd.f32 %v566_v55, %v565_v54 }
 0x17e   : > { %v568_v57 = vrot.slane %v567_v56, 1 }
 0x180   : > { %v569_v58 = vadd.f32 %v568_v57, %v567_v56 }
 0x182   : > { %v570_v59 = vadd.f32 1.0, %v569_v58 }
 0x184   : > { %v571_v60 = vmul.f32 0.5, %v570_v59 }
 0x186   : > { %v572_v61 = vsub.f32 0.0, %v571_v60 }
 0x188   : > { %v573_v62 = vmul.f32 1.442695, %v572_v61 }
 0x18a   : > { %774 = vpow2.f32 %v573_v62 }
 0x197   : > { %v775_v63 = vpop.eup %774 }
 0x198   : > { %v575_v0 = vadd.f32 1.0, %v775_v63 }
 0x19a   : > { %776 = vrcp.f32 %v575_v0 }
 0x1a7   : > { %v777_v2 = vpop.eup %776 }
 0x1a8   : > { %578 = vst [vmem:[%s172_s17] sm:$0x1] %v777_v2 }
 0x1a9   : > { %845 = shalt.err (!%p842_p0)
}
 0x1aa   : > { %s846_s27 = scalar_lea.hbm %s1099_s20, 16  ;;  %s850_s4 = scalar_lea.hbm %s1138_s2, 32 }
 0x1ab   : > { %p847_p5 = scmp.ne.s32.totalorder %s1099_s20, %s846_s27  ;;  %p851_p1 = scmp.lt.s32.totalorder %s1099_s20, %s1138_s2 }
 0x1ac   : > { %p852_p4 = scmp.lt.s32.totalorder %s850_s4, %s846_s27 }
 0x1ad   : > { %p848_p9 = pnand %p847_p5, %p1154_p3 }
 0x1ae   : > { %p853_p6 = por %p852_p4, %p851_p1 }
 0x1af   : > { %p849_p12 = pneg %p848_p9 }
 0x1b1   : > { %p854_p8 = pnand %p853_p6, %p849_p12 }
 0x1b3   : > { %857 = shalt.err (!%p854_p8)
}
 0x1b4   : > { %711 = dma.vmem_to_hbm [thread:$0]  (%p1154_p3), %s593_s8, 16, %s1099_s20, %s580_s23  }
 0x1b5 PF: > { %s604_s7 = sand.u32 1, %s888_s9   ;;  %p1155_p11 = scmp.ne.s32.totalorder %s1144_s16, 0 }
 0x1b6   : > { %p1156_p7 = scmp.ge.s32.totalorder %s900_s12, 2  ;;  %s605_s14 = scalar_lea.sflag [#allocation4], %s604_s7 }
 0x1b8   : > { %p722_p10 = pnand %p1156_p7, %p1155_p11 }
 0x1ba   : > { %p723_p2 = pneg %p722_p10 }
 0x1bc   : > { %883 = dma.done.wait (%p723_p2), %s605_s14, 16  }
 0x1bd   : > { %885 = vsyncadd (%p723_p2), %s605_s14, 4294967280  ;;  %p16_p13 = scmp.ge.s32.totalorder %s982_s21, 4   ;;  %s1157_s9 = smov %s892_s10 }
 0x1be   : > { %s1158_s10 = smov %s896_s11  ;;  %s1159_s11 = smov %s999_s29 }
 0x1bf   : > { %s1160_s12 = smov %s982_s21  ;;  %18 = sbr.rel (!%p16_p13) target bundleno = 6 (0x6), region = 77 }
 0x1c4   :  { %609 = vsyncpa [#allocation3], 1 }
 0x1c5   :  { %611 = vsyncpa [#allocation3 + $0x1], 1 }
 0x1c6   :  { %612 = vsyncpa [#allocation6], 1 }
 0x1c7   :  { %613 = vsyncpa [#allocation4], 1 }
 0x1c8   :  { %615 = vsyncpa [#allocation4 + $0x1], 1 }

</bundles_post_ra>
